<compile_context>
chip_gen: v6e
topology: v6e:2x2x1
jax: 0.10.0
libtpu: 0.0.40
codegen_flags: <defaults>
</compile_context>

<pallas_src>
import functools

import jax
import jax.numpy as jnp
from jax.experimental import pallas as pl
from jax.experimental.pallas import tpu as pltpu


def _dice_partials_kernel(x_ref, t_ref, isum_ref, dsum_ref, *, acc_w):
    """One grid step: accumulate per-H partial sums for one (batch-block, W-tile).

    x_ref, t_ref       : (bn, H, tw) VMEM tiles (input channel 1 / target).
    isum_ref, dsum_ref : (1, H, acc_w) f32 per-batch-block partial outputs,
                         resident across the W grid axis.
    """
    w_id = pl.program_id(1)

    @pl.when(w_id == 0)
    def _init():
        isum_ref[...] = jnp.zeros_like(isum_ref)
        dsum_ref[...] = jnp.zeros_like(dsum_ref)

    bn, h, tw = x_ref.shape
    n_chunks = tw // acc_w

    # Chunk-wise streaming: per (H, acc_w) chunk load -> cast -> fuse into the
    # running partials.  Working set stays vreg-friendly; no full-tile temps.
    pi = jnp.zeros((h, acc_w), jnp.float32)
    si = jnp.zeros((h, acc_w), jnp.float32)
    for b in range(bn):
        for k in range(n_chunks):
            lo = k * acc_w
            hi = lo + acc_w
            xs = x_ref[b, :, lo:hi].astype(jnp.float32)
            ts = t_ref[b, :, lo:hi].astype(jnp.float32)
            pi = pi + xs * ts          # intersect contribution
            si = si + (xs + ts)        # denominator contribution

    isum_ref[0] += pi
    dsum_ref[0] += si


def _vmem_capacity_bytes():
    """Physical VMEM of the local chip; conservative (v7x-sized) fallback."""
    try:
        cap = int(pltpu.get_tpu_info().vmem_capacity_bytes)
        if cap > 0:
            return cap
    except Exception:
        pass
    return 64 * 1024 * 1024


def _pick_tw(H, W, bytes_per_elem, budget_step):
    """Largest W tile that is a 128-multiple divisor of W (or W itself) and
    keeps one (input+target) tile within budget_step bytes."""
    if W % 128 != 0:
        # Full extent satisfies the (8,128)/full-dim rule without masking.
        return W
    max_tw = budget_step // max(1, bytes_per_elem * H)
    if max_tw >= W:
        return W                      # one contiguous H x W slab per batch
    max_tw = max(128, (max_tw // 128) * 128)
    c = int(max_tw)
    while c >= 128:
        if W % c == 0:
            return c
        c -= 128
    return 128


def _pick_bn(N, H, W, tw, bytes_per_elem, budget_step):
    """Batches per grid step: amortize per-step overhead on small images while
    keeping >= 2 batch blocks (megacore parallel axis) and bounded unrolling."""
    if N <= 1 or tw != W:
        return 1
    per_batch = H * W * bytes_per_elem
    fit = max(1, budget_step // max(1, per_batch))
    cap = min(8, N // 2, fit)
    for cand in range(int(cap), 0, -1):
        if N % cand == 0:
            return cand
    return 1


def dice_loss(input_nchw, target_nhw, epsilon=1e-5):
    """DiceLoss.forward.  input_nchw: (N, C, H, W); target_nhw: (N, H, W)."""
    N, C, H, W = input_nchw.shape
    assert C >= 2, "DiceLoss forward slices input[:, 1, :, :]; requires C >= 2"
    assert target_nhw.shape == (N, H, W), \
        "'input' and 'target' must have the same shape"

    x_bytes = jnp.dtype(input_nchw.dtype).itemsize
    t_bytes = jnp.dtype(target_nhw.dtype).itemsize
    bytes_per_elem = x_bytes + t_bytes

    cap = _vmem_capacity_bytes()
    budget_step = cap // 6                      # (input+target) bytes per step
    vmem_limit = max(32 * 1024 * 1024, cap // 2)

    tw = _pick_tw(H, W, bytes_per_elem, budget_step)
    acc_w = 128 if tw % 128 == 0 else tw
    bn = _pick_bn(N, H, W, tw, bytes_per_elem, budget_step)

    n_blocks = N // bn
    n_w_tiles = W // tw

    kernel = functools.partial(_dice_partials_kernel, acc_w=acc_w)

    isum, dsum = pl.pallas_call(
        kernel,
        out_shape=(
            jax.ShapeDtypeStruct((n_blocks, H, acc_w), jnp.float32),
            jax.ShapeDtypeStruct((n_blocks, H, acc_w), jnp.float32),
        ),
        grid=(n_blocks, n_w_tiles),
        in_specs=[
            # 4D input: channel slice [:, 1, :, :] fused into the DMA
            # (squeezed C dim; index_map selects channel 1).  Native dtype.
            pl.BlockSpec((bn, None, H, tw), lambda nb, wi: (nb, 1, 0, wi)),
            # 3D target in its original layout / native dtype.
            pl.BlockSpec((bn, H, tw), lambda nb, wi: (nb, 0, wi)),
        ],
        out_specs=(
            pl.BlockSpec((1, H, acc_w), lambda nb, wi: (nb, 0, 0)),
            pl.BlockSpec((1, H, acc_w), lambda nb, wi: (nb, 0, 0)),
        ),
        compiler_params=pltpu.CompilerParams(
            # Batch-block axis is independent (distinct output blocks) ->
            # parallel (2x on v7x megacore); W axis feeds the resident
            # accumulator -> arbitrary (reduction axis last).
            dimension_semantics=("parallel", "arbitrary"),
            vmem_limit_bytes=int(vmem_limit),
        ),
    )(input_nchw, target_nhw)

    # Tiny epilogue in plain JAX: cross-block + cross-lane reduce, dice, mean.
    intersect = jnp.sum(isum, axis=(0, 2))                      # (H,)
    denominator = jnp.sum(dsum, axis=(0, 2))                    # (H,)
    dice = -2.0 * intersect / jnp.maximum(denominator, jnp.float32(epsilon))
    # TODO(synk): optional per-class `weight`, `ignore_index` masking and
    # `skip_last_target` (all default-off in the module) are not implemented.
    return jnp.mean(1.0 - dice)


def _dice_loss_ref(input_nchw, target_nhw, epsilon=1e-5):
    """Pure-JAX reference mirroring the PyTorch code, for verification."""
    x = input_nchw[:, 1, :, :].astype(jnp.float32)
    c = x.shape[1]
    xf = jnp.transpose(x, (1, 0, 2)).reshape(c, -1)
    tf = jnp.transpose(target_nhw.astype(jnp.float32), (1, 0, 2)).reshape(c, -1)
    intersect = jnp.sum(xf * tf, axis=-1)
    denom = jnp.sum(xf + tf, axis=-1)
    dice = -2.0 * intersect / jnp.maximum(denom, epsilon)
    return jnp.mean(1.0 - dice)


if __name__ == "__main__":
    key = jax.random.PRNGKey(0)
    k1, k2 = jax.random.split(key)

    N, C, H, W = 2, 4, 16, 16
    # Input as it would come out of the model (f32 probabilities); binary
    # target kept narrow (bf16) -- the kernel casts to f32 on-chip.
    x = jax.nn.sigmoid(jax.random.normal(k1, (N, C, H, W), dtype=jnp.float32))
    target = (jax.random.uniform(k2, (N, H, W)) > 0.5).astype(jnp.bfloat16)

    loss = jax.block_until_ready(dice_loss(x, target))
    ref = jax.block_until_ready(_dice_loss_ref(x, target))

    assert jnp.allclose(loss, ref, atol=1e-5, rtol=1e-5), (loss, ref)
    print("KERNEL_OK")
</pallas_src>

<mosaic_0001>
module attributes {stable_mosaic.version = 11 : i64} {
  func.func @_dice_partials_kernel(%arg0: i32, %arg1: i32, %arg2: memref<1x1x16x16xf32, #tpu.memory_space<vmem>>, %arg3: memref<1x16x16xbf16, #tpu.memory_space<vmem>>, %arg4: memref<1x16x16xf32, #tpu.memory_space<vmem>>, %arg5: memref<1x16x16xf32, #tpu.memory_space<vmem>>) attributes {dimension_semantics = [#tpu.dimension_semantics<parallel>, #tpu.dimension_semantics<arbitrary>], iteration_bounds = array<i64: 2, 1>, scalar_prefetch = 0 : i64, scratch_operands = 0 : i64, tpu.core_type = #tpu.core_type<tc>, window_params = [{transform_indices = @transform_0, window_bounds = array<i64: 1, 1, 16, 16>}, {transform_indices = @transform_1, window_bounds = array<i64: 1, 16, 16>}, {transform_indices = @transform_2, window_bounds = array<i64: 1, 16, 16>}, {transform_indices = @transform_3, window_bounds = array<i64: 1, 16, 16>}]} {
    %c0_i32 = arith.constant 0 : i32
    %0 = arith.cmpi eq, %arg1, %c0_i32 : i32
    %1 = arith.extui %0 : i1 to i32
    %c0_i32_0 = arith.constant 0 : i32
    %2 = arith.cmpi ne, %1, %c0_i32_0 : i32
    scf.if %2 {
      %cst_20 = arith.constant 0.000000e+00 : f32
      %26 = vector.broadcast %cst_20 : f32 to vector<1x16x16xf32>
      %c0_21 = arith.constant 0 : index
      %c0_22 = arith.constant 0 : index
      %c0_23 = arith.constant 0 : index
      %27 = vector.load %arg4[%c0_21, %c0_22, %c0_23] : memref<1x16x16xf32, #tpu.memory_space<vmem>>, vector<1x16x16xf32>
      tpu.vector_store %arg4[%c0_21, %c0_22, %c0_23], %26 {strides = array<i32>} : memref<1x16x16xf32, #tpu.memory_space<vmem>>, vector<1x16x16xf32>,
      %cst_24 = arith.constant 0.000000e+00 : f32
      %28 = vector.broadcast %cst_24 : f32 to vector<1x16x16xf32>
      %c0_25 = arith.constant 0 : index
      %c0_26 = arith.constant 0 : index
      %c0_27 = arith.constant 0 : index
      %29 = vector.load %arg5[%c0_25, %c0_26, %c0_27] : memref<1x16x16xf32, #tpu.memory_space<vmem>>, vector<1x16x16xf32>
      tpu.vector_store %arg5[%c0_25, %c0_26, %c0_27], %28 {strides = array<i32>} : memref<1x16x16xf32, #tpu.memory_space<vmem>>, vector<1x16x16xf32>,
    } else {
    }
    %cst = arith.constant 0.000000e+00 : f32
    %3 = vector.broadcast %cst : f32 to vector<16x16xf32>
    %cst_1 = arith.constant 0.000000e+00 : f32
    %4 = vector.broadcast %cst_1 : f32 to vector<16x16xf32>
    %c0 = arith.constant 0 : index
    %c0_2 = arith.constant 0 : index
    %c0_3 = arith.constant 0 : index
    %c0_4 = arith.constant 0 : index
    %5 = vector.load %arg2[%c0, %c0_2, %c0_3, %c0_4] : memref<1x1x16x16xf32, #tpu.memory_space<vmem>>, vector<1x1x16x16xf32>
    %6 = vector.shape_cast %5 : vector<1x1x16x16xf32> to vector<16x16xf32>
    %c0_5 = arith.constant 0 : index
    %c0_6 = arith.constant 0 : index
    %c0_7 = arith.constant 0 : index
    %7 = vector.load %arg3[%c0_5, %c0_6, %c0_7] : memref<1x16x16xbf16, #tpu.memory_space<vmem>>, vector<1x16x16xbf16>
    %8 = vector.shape_cast %7 : vector<1x16x16xbf16> to vector<16x16xbf16>
    %9 = arith.extf %8 : vector<16x16xbf16> to vector<16x16xf32>
    %10 = arith.mulf %6, %9 : vector<16x16xf32>
    %11 = arith.addf %3, %10 : vector<16x16xf32>
    %12 = arith.addf %6, %9 : vector<16x16xf32>
    %13 = arith.addf %4, %12 : vector<16x16xf32>
    %c0_8 = arith.constant 0 : index
    %c0_9 = arith.constant 0 : index
    %c0_10 = arith.constant 0 : index
    %14 = vector.load %arg4[%c0_8, %c0_9, %c0_10] : memref<1x16x16xf32, #tpu.memory_space<vmem>>, vector<1x16x16xf32>
    %15 = vector.shape_cast %14 : vector<1x16x16xf32> to vector<16x16xf32>
    %16 = arith.addf %15, %11 : vector<16x16xf32>
    %c0_11 = arith.constant 0 : index
    %c0_12 = arith.constant 0 : index
    %c0_13 = arith.constant 0 : index
    %17 = vector.load %arg4[%c0_11, %c0_12, %c0_13] : memref<1x16x16xf32, #tpu.memory_space<vmem>>, vector<1x16x16xf32>
    %18 = vector.shape_cast %17 : vector<1x16x16xf32> to vector<16x16xf32>
    %19 = vector.shape_cast %16 : vector<16x16xf32> to vector<1x16x16xf32>
    tpu.vector_store %arg4[%c0_11, %c0_12, %c0_13], %19 {strides = array<i32>} : memref<1x16x16xf32, #tpu.memory_space<vmem>>, vector<1x16x16xf32>,
    %c0_14 = arith.constant 0 : index
    %c0_15 = arith.constant 0 : index
    %c0_16 = arith.constant 0 : index
    %20 = vector.load %arg5[%c0_14, %c0_15, %c0_16] : memref<1x16x16xf32, #tpu.memory_space<vmem>>, vector<1x16x16xf32>
    %21 = vector.shape_cast %20 : vector<1x16x16xf32> to vector<16x16xf32>
    %22 = arith.addf %21, %13 : vector<16x16xf32>
    %c0_17 = arith.constant 0 : index
    %c0_18 = arith.constant 0 : index
    %c0_19 = arith.constant 0 : index
    %23 = vector.load %arg5[%c0_17, %c0_18, %c0_19] : memref<1x16x16xf32, #tpu.memory_space<vmem>>, vector<1x16x16xf32>
    %24 = vector.shape_cast %23 : vector<1x16x16xf32> to vector<16x16xf32>
    %25 = vector.shape_cast %22 : vector<16x16xf32> to vector<1x16x16xf32>
    tpu.vector_store %arg5[%c0_17, %c0_18, %c0_19], %25 {strides = array<i32>} : memref<1x16x16xf32, #tpu.memory_space<vmem>>, vector<1x16x16xf32>,
    return
  }
  func.func @transform_0(%arg0: i32, %arg1: i32) -> (i32, i32, i32, i32) {
    %c1_i32 = arith.constant 1 : i32
    %c0_i32 = arith.constant 0 : i32
    %c0_i32_0 = arith.constant 0 : i32
    return %arg0, %c1_i32, %c0_i32, %arg1 : i32, i32, i32, i32
  }
  func.func @transform_1(%arg0: i32, %arg1: i32) -> (i32, i32, i32) {
    %c0_i32 = arith.constant 0 : i32
    %c0_i32_0 = arith.constant 0 : i32
    return %arg0, %c0_i32, %arg1 : i32, i32, i32
  }
  func.func @transform_2(%arg0: i32, %arg1: i32) -> (i32, i32, i32) {
    %c0_i32 = arith.constant 0 : i32
    %c0_i32_0 = arith.constant 0 : i32
    %c0_i32_1 = arith.constant 0 : i32
    return %arg0, %c0_i32, %c0_i32_0 : i32, i32, i32
  }
  func.func @transform_3(%arg0: i32, %arg1: i32) -> (i32, i32, i32) {
    %c0_i32 = arith.constant 0 : i32
    %c0_i32_0 = arith.constant 0 : i32
    %c0_i32_1 = arith.constant 0 : i32
    return %arg0, %c0_i32, %c0_i32_0 : i32, i32, i32
  }
}

</mosaic_0001>

<bundles_post_ra>
// kernel: tpu_custom_call.1
= control target key start
LH: loop header
LB: loop body
LE: loop exit
PB: predicated region body
PF: predicated region fallthrough
CT: control target
= control target key end

     0   :  { %s1017_s0 = inlined_call_operand.hbm [shape: f32[2,4,16,16], index: 0, kind: input, shape index: {}]   ;;  %s1018_s1 = inlined_call_operand.hbm [shape: bf16[2,16,16], index: 1, kind: input, shape index: {}]   ;;  %s1019_s2 = inlined_call_operand.hbm [shape: f32[2,16,16], index: 2, kind: output, shape index: {0}]   ;;  %s1020_s3 = inlined_call_operand.hbm [shape: f32[2,16,16], index: 3, kind: output, shape index: {1}]  }
   0x1   :  { %1021 = sst [smem:[#allocation14_spill]] %s1017_s0 }
   0x2   :  { %9 = vsyncpa [#allocation3], 0 }
   0x3   :  { %11 = vsyncpa [#allocation3 + $0x1], 0 }
   0x4   :  { %12 = vsyncpa [#allocation6], 0 }
   0x5   :  { %14 = vsyncpa [#allocation6 + $0x1], 0 }
   0x6   :  { %15 = vsyncpa [#allocation4], 0 }
   0x7   :  { %17 = vsyncpa [#allocation4 + $0x1], 0 }
   0x8   :  { %18 = vsyncpa [#allocation9], 0 }
   0x9   :  { %20 = vsyncpa [#allocation9 + $0x1], 0  ;;  %s785_s12 = smov 0   ;;  %s787_s13 = smov 0  }
   0xa   :  { %s789_s14 = smov 0   ;;  %s791_s15 = smov 0  }
   0xb   :  { %s793_s16 = smov 0   ;;  %s795_s17 = smov 0  }
   0xc LB: > { %s471_s18 = sadd.s32 4294967295, %s752_s17   ;;  %s472_s19 = sadd.s32 4294967294, %s752_s17   ;;  %s752_s17 = sphi %s795_s17, %s26_s17   ;;  %s748_s16 = sphi %s793_s16, %s1034_s16   ;;  %s744_s15 = sphi %s791_s15, %s1033_s15   ;;  %s740_s14 = sphi %s789_s14, %s1032_s14   ;;  %s736_s13 = sphi %s787_s13, %s1031_s13   ;;  %s732_s12 = sphi %s785_s12, %s1030_s12  }
   0xd   : > { %s38_s20 = sadd.s32 1, %s748_s16  ;;  %s47_s21 = sadd.s32 1, %s740_s14 }
   0xe   : > { %p40_p0 = scmp.ge.s32.totalorder %s38_s20, 2  ;;  %p54_p1 = scmp.ne.s32.totalorder %s740_s14, %s736_s13 }
   0xf   : > { %p55_p2 = scmp.eq.s32.totalorder %s752_s17, 0  ;;  %p60_p3 = scmp.ne.s32.totalorder %s736_s13, %s732_s12 }
  0x10   : > { %s1036_s20 = smov (%p40_p0, %s38_s20), 0  ;;  %p61_p5 = scmp.eq.s32.totalorder %s471_s18, 0 }
  0x11   : > { %p826_p4 = por %p55_p2, %p54_p1  ;;  %s42_s23 = ssub.s32 %s748_s16, %s1036_s20 }
  0x12   : > { %p112_p6 = scmp.eq.s32.totalorder %s471_s18, 1  ;;  %p45_p7 = scmp.eq.s32.totalorder %s42_s23, 0 }
  0x13   : > { %p832_p8 = por %p61_p5, %p60_p3  ;;  %p118_p10 = scmp.eq.s32.totalorder %s472_s19, 1 }
  0x14   : > { %p836_p9 = por %p112_p6, %p54_p1  ;;  %p524_p13 = scmp.lt.s32.totalorder %s752_s17, 2 }
  0x15   : > { %s841_s26 = scalar_select %p45_p7, %s740_s14, %s47_s21  }
  0x16   : > { %p843_p11 = por %p118_p10, %p60_p3  ;;  %s850_s28 = sand.u32 1, %s740_s14  }
  0x17   : > { %s475_s29 = sshll.u32 %s850_s28, 4  ;;  %s494_s30 = sshll.u32 %s748_s16, 10 }
  0x18   : > { %s1026_s0 = sld [smem:[#allocation14_spill]]  ;;  %s168_s7 = scalar_lea.vmem [#allocation2], %s475_s29 }
  0x19   : > { %s177_s8 = sshll.u32 %s168_s7, 4  ;;  %p862_p0 = pnand %p524_p13, %p826_p4  ;;  %s178_s8 = int_to_ptr.vmem [resolvable:$true] %s177_s8 }
  0x1a   : > { %p481_p1 = scmp.ge.s32.totalorder %s752_s17, 1  ;;  %p207_p2 = scmp.lt.s32.totalorder %s752_s17, 3 }
  0x1b   : > { %s165_s11 = scalar_lea.sflag [#allocation3], %s850_s28  ;;  %p583_p3 = pneg %p862_p0 }
  0x1c   : > { %s594_s18 = scalar_lea.vmem %s178_s8, 256  ;;  %s754_s19 = smov [#allocation2]  }
  0x1d   : > { %p595_p5 = scmp.ne.s32.totalorder %s178_s8, %s594_s18  ;;  %s599_s21 = sshll.u32 %s754_s19, 4  ;;  %s600_s21 = int_to_ptr.vmem [resolvable:$false] %s599_s21 }
  0x1e   : > { %s857_s6 = scalar_lea.hbm %s1026_s0, %s494_s30  ;;  %s601_s22 = scalar_lea.vmem %s600_s21, 512 }
  0x1f   : > { %s379_s9 = scalar_lea.hbm %s857_s6, 256  ;;  %p597_p6 = pnand %p595_p5, %p583_p3 }
  0x20   : > { %p602_p4 = scmp.lt.s32.totalorder %s178_s8, %s600_s21  ;;  %p603_p10 = scmp.lt.s32.totalorder %s601_s22, %s594_s18 }
  0x21   : > { %p598_p7 = pneg %p597_p6 }
  0x22   : > { %p604_p13 = por %p603_p10, %p602_p4 }
  0x24   : > { %p605_p12 = pnand %p604_p13, %p598_p7 }
  0x26   : > { %608 = shalt.err (!%p605_p12)
}
  0x27   : > { %s755_s23 = smov 128   ;;  %s756_s29 = smov 8  }
  0x28   : > { %513 = dma.hbm_to_vmem [thread:$0]  (!%p862_p0), %s379_s9, 256, %s178_s8, %s165_s11, %s755_s23, %s755_s23, %s756_s29  }
  0x29   : > { %p880_p5 = pnand %p481_p1, %p207_p2  ;;  %s478_s4 = sshll.u32 %s850_s28, 3 }
  0x2a   : > { %s495_s5 = sshll.u32 %s748_s16, 7  ;;  %s191_s19 = scalar_lea.vmem [#allocation5], %s478_s4 }
  0x2b   : > { %s198_s18 = scalar_lea.hbm %s1018_s1, %s495_s5  ;;  %s199_s21 = sshll.u32 %s191_s19, 4  ;;  %s200_s21 = int_to_ptr.vmem [resolvable:$true] %s199_s21 }
  0x2c   : > { %s188_s22 = scalar_lea.sflag [#allocation6], %s850_s28  ;;  %s623_s0 = scalar_lea.vmem %s200_s21, 128 }
  0x2d   : > { %p624_p12 = scmp.ne.s32.totalorder %s200_s21, %s623_s0  ;;  %s757_s8 = smov [#allocation5]  }
  0x2e   : > { %s628_s9 = sshll.u32 %s757_s8, 4  ;;  %s629_s9 = int_to_ptr.vmem [resolvable:$false] %s628_s9 }
  0x2f   : > { %p626_p6 = pnand %p624_p12, %p583_p3  ;;  %s630_s11 = scalar_lea.vmem %s629_s9, 256 }
  0x30   : > { %p631_p1 = scmp.lt.s32.totalorder %s200_s21, %s629_s9  ;;  %p632_p2 = scmp.lt.s32.totalorder %s630_s11, %s623_s0 }
  0x31   : > { %p627_p7 = pneg %p626_p6 }
  0x32   : > { %p633_p4 = por %p632_p2, %p631_p1 }
  0x34   : > { %p634_p10 = pnand %p633_p4, %p627_p7 }
  0x36   : > { %637 = shalt.err (!%p634_p10)
}
  0x37   : > { %s758_s23 = smov 64   ;;  %s759_s29 = smov 4  }
  0x38   : > { %516 = dma.hbm_to_vmem [thread:$0]  (!%p862_p0), %s198_s18, 128, %s200_s21, %s188_s22, %s758_s23, %s758_s23, %s759_s29  }
  0x39   : > { %211 = sbr.rel (%p880_p5) target bundleno = 114 (0x72), region = 28  ;;  %s898_s28 = sand.u32 (!%p880_p5), 1, %s736_s13  }
  0x3a   : > { %s482_s4 = sshll.u32 (!%p880_p5), %s898_s28, 4  ;;  %s214_s5 = scalar_lea.sflag (!%p880_p5), [#allocation3], %s898_s28 }
  0x3b   : > { %s217_s0 = scalar_lea.vmem (!%p880_p5), [#allocation2], %s482_s4 }
  0x3e   : > { %715 = dma.done.wait (%p832_p8), %s214_s5, 256  }
  0x3f   : > { %717 = vsyncadd (%p832_p8), %s214_s5, 4294967040  ;;  %s483_s10 = sshll.u32 %s898_s28, 3  ;;  %s223_s30 = scalar_lea.sflag [#allocation6], %s898_s28 }
  0x40   : > { %s226_s6 = scalar_lea.vmem [#allocation5], %s483_s10 }
  0x41   : > { %719 = dma.done.wait (%p832_p8), %s223_s30, 128  }
  0x42   : > { %721 = vsyncadd (%p832_p8), %s223_s30, 4294967168  ;;  %vm263_vm0 = vcmask 130048   ;;  %s912_s7 = scalar_lea.vmem [#allocation7], %s482_s4  ;;  %v760_v0 = vmov 0.0   ;;  %s258_s18 = scalar_lea.vmem [#allocation8], %s482_s4  ;;  %v268_v1 = vld [vmem:[%s217_s0] sm:$0xff] }
  0x43   : > { %264 = vst.msk [vmem:[%s912_s7] sm:$0xff] %vm263_vm0, %v760_v0  ;;  %265 = vst.msk [vmem:[%s912_s7 + $0x8] sm:$0xff] %vm263_vm0, %v760_v0  ;;  %v499_v2 = vld [vmem:[%s226_s6] sm:$0xff]   ;;  %v269_v3 = vld [vmem:[%s217_s0 + $0x8] sm:$0xff]  ;;  %s496_s24 = sshll.u32 %s744_s15, 8  ;;  %s314_s19 = sshll.u32 %s912_s7, 4  ;;  %s929_s19 = int_to_ptr.vmem [resolvable:$true] %s314_s19 }
  0x44   : > { %266 = vst.msk [vmem:[%s258_s18] sm:$0xff] %vm263_vm0, %v760_v0  ;;  %267 = vst.msk [vmem:[%s258_s18 + $0x8] sm:$0xff] %vm263_vm0, %v760_v0  ;;  %v500_v4 = vunpack.c.l.bf16 %v499_v2  ;;  %v501_v6 = vunpack.c.h.bf16 %v499_v2  ;;  %s927_s8 = scalar_lea.hbm %s1019_s2, %s496_s24  ;;  %s330_s15 = sshll.u32 %s258_s18, 4  ;;  %s936_s15 = int_to_ptr.vmem [resolvable:$true] %s330_s15 }
  0x45   : > { %s934_s23 = scalar_lea.hbm %s1020_s3, %s496_s24  ;;  %s296_s29 = scalar_lea.sflag [#allocation4], %s898_s28 }
  0x46   : > { %v274_v10 = vmul.f32 %v500_v4, %v268_v1  ;;  %v275_v11 = vmul.f32 %v501_v6, %v269_v3  ;;  %v278_v12 = vadd.f32 %v500_v4, %v268_v1  ;;  %v279_v13 = vadd.f32 %v501_v6, %v269_v3  ;;  %s638_s4 = scalar_lea.vmem %s929_s19, 256  ;;  %s761_s5 = smov [#allocation7]  }
  0x47   : > { %p639_p8 = scmp.ne.s32.totalorder %s929_s19, %s638_s4  ;;  %s642_s0 = sshll.u32 %s761_s5, 4  ;;  %s643_s0 = int_to_ptr.vmem [resolvable:$false] %s642_s0 }
  0x48   : > { %s644_s10 = scalar_lea.vmem %s643_s0, 512  ;;  %p645_p13 = scmp.lt.s32.totalorder %s929_s19, %s643_s0 }
  0x49   : > { %p640_p0 = pnand %p639_p8, %p836_p9  ;;  %p646_p5 = scmp.lt.s32.totalorder %s644_s10, %s638_s4 }
  0x4a   : > { %v282_v5 = vld [vmem:[%s912_s7] sm:$0xff]  ;;  %v283_v7 = vld [vmem:[%s912_s7 + $0x8] sm:$0xff] }
  0x4b   : > { %v289_v8 = vld [vmem:[%s258_s18] sm:$0xff]  ;;  %v290_v9 = vld [vmem:[%s258_s18 + $0x8] sm:$0xff]  ;;  %v284_v14 = vadd.f32 %v282_v5, %v274_v10  ;;  %v285_v15 = vadd.f32 %v283_v7, %v275_v11  ;;  %p641_p3 = pneg %p640_p0  ;;  %p647_p12 = por %p646_p5, %p645_p13 }
  0x4c   : > { %v291_v16 = vadd.f32 %v289_v8, %v278_v12  ;;  %v292_v17 = vadd.f32 %v290_v9, %v279_v13 }
  0x4d   : > { %287 = vst.msk [vmem:[%s912_s7] sm:$0xff] %vm263_vm0, %v284_v14  ;;  %288 = vst.msk [vmem:[%s912_s7 + $0x8] sm:$0xff] %vm263_vm0, %v285_v15  ;;  %p648_p6 = pnand %p647_p12, %p641_p3 }
  0x4e   : > { %293 = vst.msk [vmem:[%s258_s18] sm:$0xff] %vm263_vm0, %v291_v16  ;;  %294 = vst.msk [vmem:[%s258_s18 + $0x8] sm:$0xff] %vm263_vm0, %v292_v17 }
  0x4f   : > { %651 = shalt.err (!%p648_p6)
}
  0x50   : > { %s652_s30 = scalar_lea.hbm %s927_s8, 256  ;;  %s656_s18 = scalar_lea.hbm %s1019_s2, 512 }
  0x51   : > { %p653_p7 = scmp.ne.s32.totalorder %s927_s8, %s652_s30  ;;  %p657_p4 = scmp.lt.s32.totalorder %s927_s8, %s1019_s2 }
  0x52   : > { %p658_p10 = scmp.lt.s32.totalorder %s656_s18, %s652_s30 }
  0x53   : > { %p654_p1 = pnand %p653_p7, %p836_p9 }
  0x54   : > { %p659_p8 = por %p658_p10, %p657_p4 }
  0x55   : > { %p655_p2 = pneg %p654_p1 }
  0x57   : > { %p660_p0 = pnand %p659_p8, %p655_p2 }
  0x59   : > { %663 = shalt.err (!%p660_p0)
}
  0x5a   : > { %s762_s22 = smov 128   ;;  %s763_s9 = smov 8  }
  0x5b   : > { %506 = dma.vmem_to_hbm [thread:$0]  (%p836_p9), %s929_s19, 256, %s927_s8, %s296_s29, %s762_s22, %s762_s22, %s763_s9  }
  0x5c   : > { %s301_s11 = scalar_lea.sflag [#allocation9], %s898_s28  ;;  %s664_s4 = scalar_lea.vmem %s936_s15, 256 }
  0x5d   : > { %p665_p3 = scmp.ne.s32.totalorder %s936_s15, %s664_s4  ;;  %s764_s5 = smov [#allocation8]  }
  0x5e   : > { %s668_s0 = sshll.u32 %s764_s5, 4  ;;  %s669_s0 = int_to_ptr.vmem [resolvable:$false] %s668_s0 }
  0x5f   : > { %p666_p13 = pnand %p665_p3, %p836_p9  ;;  %s670_s10 = scalar_lea.vmem %s669_s0, 512 }
  0x60   : > { %p671_p12 = scmp.lt.s32.totalorder %s936_s15, %s669_s0  ;;  %p672_p6 = scmp.lt.s32.totalorder %s670_s10, %s664_s4 }
  0x61   : > { %p667_p5 = pneg %p666_p13 }
  0x62   : > { %p673_p7 = por %p672_p6, %p671_p12 }
  0x64   : > { %p674_p1 = pnand %p673_p7, %p667_p5 }
  0x66   : > { %677 = shalt.err (!%p674_p1)
}
  0x67   : > { %s678_s19 = scalar_lea.hbm %s934_s23, 256  ;;  %s682_s29 = scalar_lea.hbm %s1020_s3, 512 }
  0x68   : > { %p679_p2 = scmp.ne.s32.totalorder %s934_s23, %s678_s19  ;;  %p683_p8 = scmp.lt.s32.totalorder %s934_s23, %s1020_s3 }
  0x69   : > { %p684_p0 = scmp.lt.s32.totalorder %s682_s29, %s678_s19 }
  0x6a   : > { %p680_p4 = pnand %p679_p2, %p836_p9 }
  0x6b   : > { %p685_p3 = por %p684_p0, %p683_p8 }
  0x6c   : > { %p681_p10 = pneg %p680_p4 }
  0x6e   : > { %p686_p13 = pnand %p685_p3, %p681_p10 }
  0x70   : > { %689 = shalt.err (!%p686_p13)
}
  0x71   : > { %507 = dma.vmem_to_hbm [thread:$0]  (%p836_p9), %s936_s15, 256, %s934_s23, %s301_s11, %s762_s22, %s762_s22, %s763_s9  }
  0x72 PF: > { %s345_s7 = sand.u32 1, %s732_s12   ;;  %p1029_p5 = scmp.ge.s32.totalorder %s752_s17, 2 }
  0x73   : > { %s346_s18 = scalar_lea.sflag [#allocation4], %s345_s7 }
  0x74   : > { %p518_p12 = pnand %p1029_p5, %p843_p11 }
  0x76   : > { %p519_p6 = pneg %p518_p12 }
  0x78   : > { %723 = dma.done.wait (%p519_p6), %s346_s18, 256  }
  0x79   : > { %725 = vsyncadd (%p519_p6), %s346_s18, 4294967040  ;;  %s355_s24 = scalar_lea.sflag [#allocation9], %s345_s7 }
  0x7a   : > { %727 = dma.done.wait (%p519_p6), %s355_s24, 256  }
  0x7b   : > { %729 = vsyncadd (%p519_p6), %s355_s24, 4294967040  ;;  %s26_s17 = sadd.s32 1, %s752_s17   ;;  %s1030_s12 = smov %s736_s13 }
  0x7c   : > { %p23_p7 = scmp.ge.s32.totalorder %s26_s17, 4   ;;  %s1031_s13 = smov %s740_s14 }
  0x7d   : > { %s1032_s14 = smov %s841_s26  ;;  %s1033_s15 = smov %s748_s16 }
  0x7e   : > { %s1034_s16 = smov %s1036_s20  ;;  %25 = sbr.rel (!%p23_p7) target bundleno = 12 (0xc), region = 107 }
  0x83   :  { %360 = vsyncpa [#allocation3], 1 }
  0x84   :  { %362 = vsyncpa [#allocation3 + $0x1], 1 }
  0x85   :  { %363 = vsyncpa [#allocation6], 1 }
  0x86   :  { %365 = vsyncpa [#allocation6 + $0x1], 1 }
  0x87   :  { %366 = vsyncpa [#allocation4], 1 }
  0x88   :  { %368 = vsyncpa [#allocation4 + $0x1], 1 }
  0x89   :  { %369 = vsyncpa [#allocation9], 1 }
  0x8a   :  { %371 = vsyncpa [#allocation9 + $0x1], 1 }

</bundles_post_ra>
